<compile_context>
chip_gen: v7x
topology: tpu7x:2x2x1
jax: 0.10.0
libtpu: 0.0.40
codegen_flags: <defaults>
</compile_context>

<pallas_src>
import math

import jax
import jax.numpy as jnp
from jax.experimental import pallas as pl
from jax.experimental.pallas import tpu as pltpu


_DEF_VMEM_CAP = 64 * 1024 * 1024  # conservative fallback (v7x per-TC VMEM)


def _vmem_capacity_bytes() -> int:
    try:
        return int(pltpu.get_tpu_info().vmem_capacity_bytes)
    except Exception:
        return _DEF_VMEM_CAP


def _pick_node_tile(n_nodes: int) -> int:
    """Node-row tile for the adjacency matmul: full graph if small, otherwise the
    largest candidate that divides N (all candidates are multiples of 8)."""
    if n_nodes <= 512:
        return n_nodes
    for cand in (512, 256, 128, 64, 32, 16, 8):
        if n_nodes % cand == 0:
            return cand
    return n_nodes  # irregular N: fall back to untiled rows


def _pick_batch_chunk(batch: int, fout: int, lane_budget: int) -> int:
    """Batch elements folded into the lane dimension per grid step.
    bc*Fout must be a multiple of 128 (lane tile) unless the whole batch is taken."""
    if batch * fout <= lane_budget:
        return batch
    for bc in range(batch, 0, -1):
        if batch % bc == 0 and bc * fout <= lane_budget and (bc * fout) % 128 == 0:
            return bc
    return batch


def _block_footprint(tn, tk, lanes, adj_bpe, xw_bpe, out_bpe, has_self):
    """Rough per-step VMEM bytes: double-buffered blocks + f32 accumulator."""
    adj_blk = tn * tk * adj_bpe
    xw_blk = tk * lanes * xw_bpe
    out_blk = tn * lanes * out_bpe
    xs_blk = tn * lanes * out_bpe if has_self else 0
    bias_blk = lanes * 4
    acc = tn * lanes * 4
    return 2 * (adj_blk + xw_blk + out_blk + xs_blk + bias_blk) + acc


def _pick_k_tile(n_nodes, tn, lanes, adj_bpe, xw_bpe, out_bpe, has_self, budget):
    """Tile the N contraction only when the untiled blocks would blow the VMEM budget.
    K tiles must be multiples of 128 (lane tiling of the adj block's last dim)."""
    if _block_footprint(tn, n_nodes, lanes, adj_bpe, xw_bpe, out_bpe,
                        has_self) <= budget:
        return n_nodes
    for cand in (2048, 1024, 512, 256, 128):
        if (n_nodes % cand == 0
                and _block_footprint(tn, cand, lanes, adj_bpe, xw_bpe, out_bpe,
                                     has_self) <= budget):
            return cand
    return n_nodes  # irregular N: no legal lane-aligned K tile; fall back to full K


def _make_gcn_kernel(has_self: bool):
    def kernel(adj_ref, xw_ref, b_ref, *rest):
        if has_self:
            xs_ref, o_ref, acc_ref = rest
        else:
            o_ref, acc_ref = rest
            xs_ref = None

        k = pl.program_id(2)

        @pl.when(k == 0)
        def _():
            acc_ref[...] = jnp.zeros_like(acc_ref)

        # Dominant matmul: (tn, tk) @ (tk, bc*Fout), bf16 in / f32 accumulate.
        acc_ref[...] += jnp.dot(adj_ref[...], xw_ref[...],
                                preferred_element_type=jnp.float32)

        @pl.when(k == pl.num_programs(2) - 1)
        def _():
            out = acc_ref[...] + b_ref[...].astype(jnp.float32)
            if has_self:
                out = out + xs_ref[...].astype(jnp.float32)
            o_ref[...] = out.astype(o_ref.dtype)

    return kernel


def batch_gcn_conv(x, adj, w_neigh, b_neigh=None, w_self=None, *,
                   node_tile=None, batch_chunk=None, k_tile=None,
                   compute_dtype=jnp.bfloat16):
    """Forward pass of BatchGCNConv.

    x:        [B, N, Fin]
    adj:      [N, N]
    w_neigh:  [Fout, Fin]   (PyTorch nn.Linear weight layout)
    b_neigh:  [Fout] or None
    w_self:   optional [Fout, Fin]
    compute_dtype: dtype fed to the MXU for the adj matmul (accumulation is f32).
    returns   [B, N, Fout]
    """
    B, N, Fin = x.shape
    Fout = w_neigh.shape[0]
    has_self = w_self is not None
    out_dtype = x.dtype

    vmem_cap = _vmem_capacity_bytes()
    vmem_limit = min(int(vmem_cap * 0.75), 128 * 1024 * 1024)
    lane_budget = 1024 if vmem_cap >= (96 << 20) else 512

    tn = node_tile if node_tile is not None else _pick_node_tile(N)
    bc = (batch_chunk if batch_chunk is not None
          else _pick_batch_chunk(B, Fout, lane_budget))

    if N % tn != 0 or not (tn % 8 == 0 or tn == N):
        raise ValueError(f"node tile {tn} incompatible with N={N}")
    if B % bc != 0 or not ((bc * Fout) % 128 == 0 or bc == B):
        raise ValueError(f"batch chunk {bc} incompatible with B={B}, Fout={Fout}")

    lanes = bc * Fout
    adj_bpe = jnp.dtype(compute_dtype).itemsize
    xw_bpe = adj_bpe
    out_bpe = jnp.dtype(out_dtype).itemsize

    if k_tile is None:
        k_tile = _pick_k_tile(N, tn, lanes, adj_bpe, xw_bpe, out_bpe, has_self,
                              budget=int(vmem_limit * 0.6))
    tk = k_tile
    if N % tk != 0 or not (tk % 128 == 0 or tk == N):
        raise ValueError(f"k tile {tk} incompatible with N={N}")

    n_tiles, n_chunks, n_k = N // tn, B // bc, N // tk

    # ---- Hoisted (cheap, O(N*Fin*Fout)) matmuls: done once, in plain XLA. ----
    hp = jax.lax.Precision.HIGHEST
    wn_t = jnp.transpose(w_neigh).astype(jnp.float32)             # (Fin, Fout)
    # Folded batch-into-lanes layout: xw[n, b*Fout + f] = (x[b] @ Wn)[n, f]
    xw = jnp.einsum("bni,io->nbo", x.astype(jnp.float32), wn_t,
                    precision=hp).reshape(N, B * Fout).astype(compute_dtype)
    adj_c = adj.astype(compute_dtype)
    if b_neigh is None:
        b_neigh = jnp.zeros((Fout,), dtype=jnp.float32)
    bias = jnp.tile(b_neigh.astype(jnp.float32).reshape(1, Fout), (1, bc))  # (1, lanes)
    if has_self:
        ws_t = jnp.transpose(w_self).astype(jnp.float32)
        xself = jnp.einsum("bni,io->nbo", x.astype(jnp.float32), ws_t,
                           precision=hp).reshape(N, B * Fout).astype(out_dtype)

    # ---- Grid order: keep the larger streamed operand stationary across the
    # inner axis so it is fetched from HBM exactly once (when n_k == 1). ----
    chunk_inner = (N * adj_bpe) >= (B * Fout * xw_bpe)
    if chunk_inner:
        grid = (n_tiles, n_chunks, n_k)
        adj_map = lambda i, c, k: (i, k)
        xw_map = lambda i, c, k: (k, c)
        const_map = lambda i, c, k: (0, 0)
        oc_map = lambda i, c, k: (i, c)
    else:
        grid = (n_chunks, n_tiles, n_k)
        adj_map = lambda c, i, k: (i, k)
        xw_map = lambda c, i, k: (k, c)
        const_map = lambda c, i, k: (0, 0)
        oc_map = lambda c, i, k: (i, c)

    in_specs = [
        pl.BlockSpec((tn, tk), adj_map),       # adjacency row/col tile
        pl.BlockSpec((tk, lanes), xw_map),     # folded x @ Wn (precomputed)
        pl.BlockSpec((1, lanes), const_map),   # bias (grid-invariant)
    ]
    args = [adj_c, xw, bias]
    if has_self:
        in_specs.append(pl.BlockSpec((tn, lanes), oc_map))  # folded x @ Ws (precomputed)
        args.append(xself)

    out_spec = pl.BlockSpec((tn, lanes), oc_map)

    # Advisory cost estimate (helps XLA schedule/overlap around the custom call).
    flops = 2 * N * N * B * Fout
    adj_passes = 1 if (chunk_inner and n_k == 1) else n_chunks
    xw_passes = 1 if (not chunk_inner and n_k == 1) else n_tiles
    bytes_accessed = (adj_passes * N * N * adj_bpe
                      + xw_passes * N * B * Fout * xw_bpe
                      + (2 if has_self else 1) * N * B * Fout * out_bpe
                      + lanes * 4)

    out_folded = pl.pallas_call(
        _make_gcn_kernel(has_self),
        out_shape=jax.ShapeDtypeStruct((N, B * Fout), out_dtype),
        grid=grid,
        in_specs=in_specs,
        out_specs=out_spec,
        scratch_shapes=[pltpu.VMEM((tn, lanes), jnp.float32)],
        compiler_params=pltpu.CompilerParams(
            dimension_semantics=("parallel", "parallel", "arbitrary"),
            vmem_limit_bytes=vmem_limit,
        ),
        cost_estimate=pl.CostEstimate(
            flops=int(flops), transcendentals=0, bytes_accessed=int(bytes_accessed)),
    )(*args)

    # Un-fold the batch from the lane dimension: (N, B*Fout) -> (B, N, Fout).
    # TODO(synk): downstream consumers could accept the folded (N, B*Fout) layout
    # directly (or fuse this transpose into the next op) and skip one HBM round trip.
    return out_folded.reshape(N, B, Fout).transpose(1, 0, 2)


def _reference(x, adj, w_neigh, b_neigh, w_self=None):
    hp = jax.lax.Precision.HIGHEST
    ax = jnp.einsum("nm,bmf->bnf", adj, x, precision=hp)
    out = jnp.einsum("bnf,of->bno", ax, w_neigh, precision=hp) + b_neigh
    if w_self is not None:
        out = out + jnp.einsum("bnf,of->bno", x, w_self, precision=hp)
    return out


if __name__ == "__main__":
    # --- small shapes consistent with the module's forward ---
    B, N, Fin, Fout = 2, 16, 32, 64

    key = jax.random.PRNGKey(0)
    kx, kadj, kwn, kbn, kws = jax.random.split(key, 5)

    x = jax.random.normal(kx, (B, N, Fin), dtype=jnp.float32)
    adj = jax.random.uniform(kadj, (N, N), dtype=jnp.float32)
    adj = adj / jnp.sum(adj, axis=-1, keepdims=True)       # row-normalised adjacency

    bound = 1.0 / math.sqrt(Fin)
    w_neigh = jax.random.uniform(kwn, (Fout, Fin), minval=-bound, maxval=bound,
                                 dtype=jnp.float32)
    b_neigh = jax.random.uniform(kbn, (Fout,), minval=-bound, maxval=bound,
                                 dtype=jnp.float32)
    w_self = jax.random.uniform(kws, (Fout, Fin), minval=-bound, maxval=bound,
                                dtype=jnp.float32)

    # 1) gcn=True path, f32 compute (bit-accurate check of the kernel plumbing)
    out_gcn = jax.block_until_ready(
        batch_gcn_conv(x, adj, w_neigh, b_neigh, compute_dtype=jnp.float32))
    ref_gcn = _reference(x, adj, w_neigh, b_neigh)
    assert out_gcn.shape == (B, N, Fout)
    assert jnp.allclose(out_gcn, ref_gcn, atol=2e-4, rtol=2e-4), \
        float(jnp.max(jnp.abs(out_gcn - ref_gcn)))

    # 2) gcn=False path (adds weight_self), default bf16 MXU path (f32 accumulation)
    out_full = jax.block_until_ready(
        batch_gcn_conv(x, adj, w_neigh, b_neigh, w_self=w_self))
    ref_full = _reference(x, adj, w_neigh, b_neigh, w_self=w_self)
    assert out_full.shape == (B, N, Fout)
    assert jnp.allclose(out_full, ref_full, atol=3e-2, rtol=3e-2), \
        float(jnp.max(jnp.abs(out_full - ref_full)))

    # 3) General path: node tiling + lane-folded batch chunks + K-tiled contraction
    #    with the in-kernel f32 accumulator (bf16 MXU inputs).
    B2, N2, Fin2, Fout2 = 4, 256, 16, 64
    k2 = jax.random.split(jax.random.PRNGKey(1), 5)
    x2 = jax.random.normal(k2[0], (B2, N2, Fin2), dtype=jnp.float32)
    adj2 = jax.random.uniform(k2[1], (N2, N2), dtype=jnp.float32)
    adj2 = adj2 / jnp.sum(adj2, axis=-1, keepdims=True)
    bound2 = 1.0 / math.sqrt(Fin2)
    wn2 = jax.random.uniform(k2[2], (Fout2, Fin2), minval=-bound2, maxval=bound2,
                             dtype=jnp.float32)
    bn2 = jax.random.uniform(k2[3], (Fout2,), minval=-bound2, maxval=bound2,
                             dtype=jnp.float32)
    ws2 = jax.random.uniform(k2[4], (Fout2, Fin2), minval=-bound2, maxval=bound2,
                             dtype=jnp.float32)

    out_tiled = jax.block_until_ready(
        batch_gcn_conv(x2, adj2, wn2, bn2, w_self=ws2,
                       node_tile=128, batch_chunk=2, k_tile=128))
    ref_tiled = _reference(x2, adj2, wn2, bn2, w_self=ws2)
    assert out_tiled.shape == (B2, N2, Fout2)
    assert jnp.allclose(out_tiled, ref_tiled, atol=3e-2, rtol=3e-2), \
        float(jnp.max(jnp.abs(out_tiled - ref_tiled)))

    print("KERNEL_OK")
</pallas_src>

<mosaic_0001>
module attributes {stable_mosaic.version = 11 : i64} {
  func.func @kernel(%arg0: i32, %arg1: i32, %arg2: i32, %arg3: memref<16x16xf32, #tpu.memory_space<vmem>>, %arg4: memref<16x128xf32, #tpu.memory_space<vmem>>, %arg5: memref<1x128xf32, #tpu.memory_space<vmem>>, %arg6: memref<16x128xf32, #tpu.memory_space<vmem>>, %arg7: memref<16x128xf32, #tpu.memory_space<vmem>>) attributes {dimension_semantics = [#tpu.dimension_semantics<parallel>, #tpu.dimension_semantics<parallel>, #tpu.dimension_semantics<arbitrary>], iteration_bounds = array<i64: 1, 1, 1>, scalar_prefetch = 0 : i64, scratch_operands = 1 : i64, tpu.core_type = #tpu.core_type<tc>, window_params = [{transform_indices = @transform_0, window_bounds = array<i64: 16, 16>}, {transform_indices = @transform_1, window_bounds = array<i64: 16, 128>}, {pipeline_mode = #tpu.pipeline_mode<synchronous>, transform_indices = @transform_2, window_bounds = array<i64: 1, 128>}, {transform_indices = @transform_3, window_bounds = array<i64: 16, 128>}]} {
    %c0_i32 = arith.constant 0 : i32
    %0 = arith.cmpi eq, %arg2, %c0_i32 : i32
    %1 = arith.extui %0 : i1 to i32
    %c0_i32_0 = arith.constant 0 : i32
    %2 = arith.cmpi ne, %1, %c0_i32_0 : i32
    scf.if %2 {
      %cst_10 = arith.constant 0.000000e+00 : f32
      %12 = vector.broadcast %cst_10 : f32 to vector<16x128xf32>
      %c0_11 = arith.constant 0 : index
      %c0_12 = arith.constant 0 : index
      %13 = vector.load %arg7[%c0_11, %c0_12] : memref<16x128xf32, #tpu.memory_space<vmem>>, vector<16x128xf32>
      tpu.vector_store %arg7[%c0_11, %c0_12], %12 {strides = array<i32>} : memref<16x128xf32, #tpu.memory_space<vmem>>, vector<16x128xf32>,
    } else {
    }
    %c0 = arith.constant 0 : index
    %c0_1 = arith.constant 0 : index
    %3 = vector.load %arg7[%c0, %c0_1] : memref<16x128xf32, #tpu.memory_space<vmem>>, vector<16x128xf32>
    %c0_2 = arith.constant 0 : index
    %c0_3 = arith.constant 0 : index
    %4 = vector.load %arg3[%c0_2, %c0_3] : memref<16x16xf32, #tpu.memory_space<vmem>>, vector<16x16xf32>
    %c0_4 = arith.constant 0 : index
    %c0_5 = arith.constant 0 : index
    %5 = vector.load %arg4[%c0_4, %c0_5] : memref<16x128xf32, #tpu.memory_space<vmem>>, vector<16x128xf32>
    %cst = arith.constant dense<0.000000e+00> : vector<16x128xf32>
    %6 = tpu.matmul %4, %5, %cst {dimension_numbers = #tpu.dot_dimension_numbers<[1], [0], [0], [1], [0, 0, 1, 1], [], []>} : vector<16x16xf32>, vector<16x128xf32>, vector<16x128xf32> -> vector<16x128xf32>
    %7 = arith.addf %3, %6 : vector<16x128xf32>
    %c0_6 = arith.constant 0 : index
    %c0_7 = arith.constant 0 : index
    %8 = vector.load %arg7[%c0_6, %c0_7] : memref<16x128xf32, #tpu.memory_space<vmem>>, vector<16x128xf32>
    tpu.vector_store %arg7[%c0_6, %c0_7], %7 {strides = array<i32>} : memref<16x128xf32, #tpu.memory_space<vmem>>, vector<16x128xf32>,
    %c0_i32_8 = arith.constant 0 : i32
    %9 = arith.cmpi eq, %arg2, %c0_i32_8 : i32
    %10 = arith.extui %9 : i1 to i32
    %c0_i32_9 = arith.constant 0 : i32
    %11 = arith.cmpi ne, %10, %c0_i32_9 : i32
    scf.if %11 {
      %c0_10 = arith.constant 0 : index
      %c0_11 = arith.constant 0 : index
      %12 = vector.load %arg7[%c0_10, %c0_11] : memref<16x128xf32, #tpu.memory_space<vmem>>, vector<16x128xf32>
      %c0_12 = arith.constant 0 : index
      %c0_13 = arith.constant 0 : index
      %13 = vector.load %arg5[%c0_12, %c0_13] : memref<1x128xf32, #tpu.memory_space<vmem>>, vector<1x128xf32>
      %14 = vector.broadcast %13 : vector<1x128xf32> to vector<16x128xf32>
      %15 = arith.addf %12, %14 : vector<16x128xf32>
      %c0_14 = arith.constant 0 : index
      %c0_15 = arith.constant 0 : index
      %16 = vector.load %arg6[%c0_14, %c0_15] : memref<16x128xf32, #tpu.memory_space<vmem>>, vector<16x128xf32>
      tpu.vector_store %arg6[%c0_14, %c0_15], %15 {strides = array<i32>} : memref<16x128xf32, #tpu.memory_space<vmem>>, vector<16x128xf32>,
    } else {
    }
    return
  }
  func.func @transform_0(%arg0: i32, %arg1: i32, %arg2: i32) -> (i32, i32) {
    %c0_i32 = arith.constant 0 : i32
    return %arg1, %arg2 : i32, i32
  }
  func.func @transform_1(%arg0: i32, %arg1: i32, %arg2: i32) -> (i32, i32) {
    %c0_i32 = arith.constant 0 : i32
    return %arg2, %arg0 : i32, i32
  }
  func.func @transform_2(%arg0: i32, %arg1: i32, %arg2: i32) -> (i32, i32) {
    %c0_i32 = arith.constant 0 : i32
    %c0_i32_0 = arith.constant 0 : i32
    %c0_i32_1 = arith.constant 0 : i32
    return %c0_i32, %c0_i32_0 : i32, i32
  }
  func.func @transform_3(%arg0: i32, %arg1: i32, %arg2: i32) -> (i32, i32) {
    %c0_i32 = arith.constant 0 : i32
    return %arg1, %arg0 : i32, i32
  }
}

</mosaic_0001>

<bundles_post_ra>
// kernel: tpu_custom_call.1
= control target key start
LH: loop header
LB: loop body
LE: loop exit
PB: predicated region body
PF: predicated region fallthrough
CT: control target
= control target key end

     0   :  { %8 = vsyncpa [#allocation4], 0  ;;  %s343_s0 = inlined_call_operand.hbm [shape: f32[16,16], index: 0, kind: input, shape index: {}]   ;;  %s344_s1 = inlined_call_operand.hbm [shape: f32[16,128], index: 1, kind: input, shape index: {}]   ;;  %s345_s2 = inlined_call_operand.vmem [shape: f32[1,128], index: 2, kind: input, shape index: {}]   ;;  %s346_s3 = inlined_call_operand.hbm [shape: f32[16,128], index: 3, kind: output, shape index: {}]  }
   0x1   :  { %9 = vsyncpa [#allocation7], 0 }
   0x2   :  { %10 = vsyncpa [#allocation5], 0  ;;  %s270_s12 = smov [#allocation3]   ;;  %s198_s16 = scalar_lea.hbm %s343_s0, 256 }
   0x3   :  { %s16_s13 = sshll.u32 %s270_s12, 4  ;;  %p199_p0 = scmp.ne.s32.totalorder %s343_s0, %s198_s16  ;;  %s17_s13 = int_to_ptr.vmem [resolvable:$true] %s16_s13 }
   0x4   :  { %p202_p1 = scmp.lt.u32.totalorder %s198_s16, %s343_s0 }
   0x6   :  { %p204_p2 = pnand %p202_p1, %p199_p0 }
   0x8   :  { %207 = shalt.err (!%p204_p2)
}
   0x9   :  { %s208_s21 = scalar_lea.vmem %s17_s13, 256  ;;  %p213_p4 = scmp.lt.s32.totalorder %s17_s13, %s17_s13 }
   0xa   :  { %p209_p3 = scmp.ne.s32.totalorder %s17_s13, %s208_s21  ;;  %p214_p5 = scmp.lt.s32.totalorder %s208_s21, %s208_s21 }
   0xc   :  { %p215_p6 = por %p214_p5, %p213_p4 }
   0xe   :  { %p216_p7 = pnand %p215_p6, %p209_p3 }
  0x10   :  { %219 = shalt.err (!%p216_p7)
}
  0x11   :  { %s271_s22 = smov 128   ;;  %s272_s23 = smov 8  }
  0x12   :  { %22 = dma.hbm_to_vmem [thread:$0]  %s343_s0, 256, %s17_s13, [#allocation4], %s271_s22, %s271_s22, %s272_s23  }
  0x13   :  { %s273_s26 = smov [#allocation6]   ;;  %s220_s30 = scalar_lea.hbm %s344_s1, 256 }
  0x14   :  { %s28_s27 = sshll.u32 %s273_s26, 4  ;;  %p221_p8 = scmp.ne.s32.totalorder %s344_s1, %s220_s30  ;;  %s29_s27 = int_to_ptr.vmem [resolvable:$true] %s28_s27 }
  0x15   :  { %p224_p9 = scmp.lt.u32.totalorder %s220_s30, %s344_s1 }
  0x17   :  { %p226_p10 = pnand %p224_p9, %p221_p8 }
  0x19   :  { %229 = shalt.err (!%p226_p10)
}
  0x1a   :  { %s230_s8 = scalar_lea.vmem %s29_s27, 256  ;;  %p235_p12 = scmp.lt.s32.totalorder %s29_s27, %s29_s27 }
  0x1b   :  { %p231_p11 = scmp.ne.s32.totalorder %s29_s27, %s230_s8  ;;  %p236_p13 = scmp.lt.s32.totalorder %s230_s8, %s230_s8 }
  0x1d   :  { %p237_p0 = por %p236_p13, %p235_p12 }
  0x1f   :  { %p238_p1 = pnand %p237_p0, %p231_p11 }
  0x21   :  { %241 = shalt.err (!%p238_p1)
}
  0x22   :  { %34 = dma.hbm_to_vmem [thread:$0]  %s344_s1, 256, %s29_s27, [#allocation7], %s271_s22, %s271_s22, %s272_s23  }
  0x23   :  { %264 = dma.done.wait [#allocation4], 256  }
  0x24   :  { %265 = vsyncadd [#allocation4], 4294967040 }
  0x25   :  { %266 = dma.done.wait [#allocation7], 256  }
  0x26   :  { %267 = vsyncadd [#allocation7], 4294967040  ;;  %vm55_vm0 = vcmask 130048   ;;  %v53_v0 = vld [vmem:[#allocation6] sm:$0xff]  ;;  %v54_v1 = vld [vmem:[#allocation6 + $0x8] sm:$0xff]  ;;  %s274_s12 = smov [#allocation8]  }
  0x27   :  { %v51_v2 = vld [vmem:[#allocation3] sm:$0xff]  ;;  %v189_v3 = vpack.c.bf16 %v54_v1, %v53_v0  ;;  %v52_v4 = vld [vmem:[#allocation3 + $0x8] sm:$0xff]  ;;  %s162_s1 = sshll.u32 %s274_s12, 4  ;;  %s163_s1 = int_to_ptr.vmem [resolvable:$true] %s162_s1 }
  0x28   :  { %186 = vmatprep.mubr.msk.f32.mxu0 %vm55_vm0, %v51_v2  ;;  %v177_v5 = vld [vmem:[%s345_s2] ss:$0 sm:$0xff]  ;;  %s242_s13 = scalar_lea.vmem %s163_s1, 256  ;;  %p247_p3 = scmp.lt.s32.totalorder %s163_s1, %s163_s1 }
  0x29   :  { %190 = vmatprep.subr.bf16.mxu0 %v189_v3  ;;  %p243_p2 = scmp.ne.s32.totalorder %s163_s1, %s242_s13  ;;  %p248_p4 = scmp.lt.s32.totalorder %s242_s13, %s242_s13 }
  0x2a   :  { %192 = vmatpush3.bf16.msra.mxu0 %v189_v3 }
  0x2b   :  { %p249_p5 = por %p248_p4, %p247_p3 }
  0x2d   :  { %187 = vmatmul.mubr.msk.f32.vlgmr.msra.gmra.mrb[0].mxu0 %vm55_vm0, %v52_v4  ;;  %p250_p6 = pnand %p249_p5, %p243_p2 }
 0x100   :  { %v188_v6 = vpop.f32.mrb[0].mxu0 }
 0x101   :  { %v154_v7 = vadd.f32 %v188_v6, %v177_v5  ;;  %v128_v8 = vpop.f32.mrb[1].mxu0 }
 0x102   :  { %v153_v9 = vadd.f32 %v177_v5, %v128_v8 }
 0x103   :  { %156 = vst [vmem:[#allocation8 + $0x8] sm:$0xff] %v154_v7 }
 0x104   :  { %155 = vst [vmem:[#allocation8] sm:$0xff] %v153_v9 }
 0x105   :  { %253 = shalt.err (!%p250_p6)
}
 0x106   :  { %s254_s2 = scalar_lea.hbm %s346_s3, 256 }
 0x107   :  { %p255_p7 = scmp.ne.s32.totalorder %s346_s3, %s254_s2  ;;  %p258_p8 = scmp.lt.u32.totalorder %s254_s2, %s346_s3 }
 0x109   :  { %p260_p9 = pnand %p258_p8, %p255_p7 }
 0x10b   :  { %263 = shalt.err (!%p260_p9)
}
 0x10c   :  { %168 = dma.vmem_to_hbm [thread:$0]  %s163_s1, 256, %s346_s3, [#allocation5], %s271_s22, %s271_s22, %s272_s23  }
 0x10d   :  { %268 = dma.done.wait [#allocation5], 256  }
 0x10e   :  { %269 = vsyncadd [#allocation5], 4294967040 }
 0x10f   :  { %172 = vsyncpa [#allocation4], 1 }
 0x110   :  { %173 = vsyncpa [#allocation7], 1 }
 0x111   :  { %174 = vsyncpa [#allocation5], 1 }

</bundles_post_ra>
